<compile_context>
chip_gen: v7x
topology: tpu7x:2x2x1
jax: 0.10.0
libtpu: 0.0.40
codegen_flags: <defaults>
</compile_context>

<pallas_src>
import math

import jax
import jax.numpy as jnp
from jax.experimental import pallas as pl
from jax.experimental.pallas import tpu as pltpu


def _token_embed_kernel(xp_ref, w_ref, o_ref, xcol_ref):
    # xp_ref  : (tb, seqlen + pad, c_in)      replicate-left-padded input (full time axis)
    # w_ref   : (d_kernel * c_in, d_model_p)  taps folded into one contraction dim
    # o_ref   : (tb, ts, d_model_p)           output tile
    # xcol_ref: (tb, ts, d_kernel * c_in)     VMEM scratch: im2col LHS for this tile
    tb, ts, _ = o_ref.shape
    c_in = xp_ref.shape[2]
    d_kernel = w_ref.shape[0] // c_in

    si = pl.program_id(1)
    base = pl.multiple_of(si * ts, ts)          # first output row of this seqlen tile

    w = w_ref[...]                              # (K, d_model_p); resident, loaded once

    for b in range(tb):                         # static unroll; tb is small
        # Assemble the im2col LHS: lane block k holds the tap-k shifted rows
        # (replicate padding was applied on the time axis of xp).
        for k in range(d_kernel):
            xcol_ref[b, :, k * c_in:(k + 1) * c_in] = xp_ref[b, pl.ds(base + k, ts), :]
        # One MXU matmul (K = d_kernel * c_in) per batch row; the result goes
        # directly into the output ref -- no carried accumulator.
        o_ref[b] = jnp.dot(
            xcol_ref[b], w, preferred_element_type=jnp.float32
        ).astype(o_ref.dtype)


def _choose_tiles(batch, seqlen, d_model_p, itemsize, target_bytes):
    """Pick (batch_tile, seqlen_tile).

    Goal: output blocks of a few MiB (big enough to amortize the ~0.35us
    per-grid-step overhead and reach HBM roofline, small enough to
    double-buffer comfortably inside v7x's 64 MiB VMEM), and at least two
    grid steps so both v7x TensorCores get work.
    """
    ts = seqlen
    while (ts * d_model_p * itemsize > target_bytes
           and ts % 2 == 0 and (ts // 2) % 8 == 0):
        ts //= 2
    tb = 1
    for cand in range(batch, 0, -1):
        if batch % cand == 0 and cand * ts * d_model_p * itemsize <= target_bytes:
            tb = cand
            break
    if (batch // tb) * (seqlen // ts) < 2:      # ensure >= 2 grid steps
        if tb > 1:
            tb = max(d for d in range(1, tb) if batch % d == 0)
        elif ts % 2 == 0 and (ts // 2) % 8 == 0:
            ts //= 2
    return tb, ts


def token_embedding(x, weight, seqlen, *, compute_dtype=None,
                    target_block_bytes=4 * 1024 * 1024):
    """Pallas TPU forward of TokenEmbedding.

    x      : (B, L, c_in)               -- tensor forward() receives (pre-permute)
    weight : (d_model, c_in, d_kernel)  -- nn.Conv1d weight (bias=False)
    seqlen : output length; requires seqlen <= L (the module always truncates).

    Returns (B, seqlen, d_model), equal to
      Conv1d(c_in, d_model, d_kernel, padding=d_kernel-1,
             padding_mode='replicate', bias=False)(x.permute(0, 2, 1))
        [..., :seqlen].transpose(1, 2)
    """
    B, L, c_in = x.shape
    d_model, c_in_w, d_kernel = weight.shape
    if c_in_w != c_in:
        raise ValueError(f"weight c_in {c_in_w} != input c_in {c_in}")
    if seqlen > L:
        raise ValueError("seqlen > L would require right-side replicate padding; "
                         "the module only truncates (needs seqlen <= L).")
    pad = d_kernel - 1

    if compute_dtype is not None:   # optional bf16 I/O: halves HBM traffic on v6e/v7x
        x = x.astype(compute_dtype)
        weight = weight.astype(compute_dtype)

    # Fold the taps into a single contraction dim: w_flat[k*c_in + c, o] = W[o, c, k].
    w_flat = jnp.transpose(weight, (2, 1, 0)).reshape(d_kernel * c_in, d_model)

    # Lane-dense output: pad d_model up to a multiple of 128, slice off afterwards.
    d_model_p = -(-d_model // 128) * 128
    if d_model_p != d_model:
        w_flat = jnp.pad(w_flat, ((0, 0), (0, d_model_p - d_model)))

    # Replicate pad on the left only (truncation to seqlen <= L means the right
    # pad of the PyTorch conv is never read).  Input traffic is ~c_in/d_model of
    # the output traffic, so this wrapper pass is negligible.
    xp = jnp.concatenate(
        [jnp.repeat(x[:, :1, :], pad, axis=1), x[:, :seqlen, :]], axis=1)

    itemsize = jnp.dtype(x.dtype).itemsize
    K = d_kernel * c_in
    tb, ts = _choose_tiles(B, seqlen, d_model_p, itemsize, target_block_bytes)
    nb, ns = B // tb, seqlen // ts

    # Explicit VMEM budget: double-buffered blocks + scratch, with headroom,
    # clamped below v7x's 64 MiB physical VMEM.
    block_bytes = (2 * tb * (seqlen + pad) * c_in * itemsize
                   + 2 * K * d_model_p * itemsize
                   + 2 * tb * ts * d_model_p * itemsize
                   + tb * ts * K * itemsize)
    vmem_limit = int(min(max(2 * block_bytes, 32 * 1024 * 1024),
                         60 * 1024 * 1024))

    out = pl.pallas_call(
        _token_embed_kernel,
        out_shape=jax.ShapeDtypeStruct((B, seqlen, d_model_p), x.dtype),
        grid_spec=pltpu.PrefetchScalarGridSpec(
            num_scalar_prefetch=0,
            grid=(nb, ns),
            in_specs=[
                # full (padded) time axis per batch tile; reused across seqlen tiles
                pl.BlockSpec((tb, seqlen + pad, c_in), lambda bi, si: (bi, 0, 0)),
                # folded weight, resident across the whole grid
                pl.BlockSpec((K, d_model_p), lambda bi, si: (0, 0)),
            ],
            out_specs=pl.BlockSpec((tb, ts, d_model_p),
                                   lambda bi, si: (bi, si, 0)),
            scratch_shapes=[pltpu.VMEM((tb, ts, K), x.dtype)],
        ),
        compiler_params=pltpu.CompilerParams(
            dimension_semantics=("parallel", "parallel"),
            vmem_limit_bytes=vmem_limit,
        ),
    )(xp, w_flat)

    if d_model_p != d_model:
        out = out[..., :d_model]
    return out


def _reference(x, weight, seqlen):
    """Pure-JAX reference (clamped-index formulation, highest precision)."""
    B, L, c_in = x.shape
    d_model, _, d_kernel = weight.shape
    pad = d_kernel - 1
    t = jnp.arange(seqlen)
    out = jnp.zeros((B, seqlen, d_model), jnp.float32)
    for k in range(d_kernel):
        idx = jnp.clip(t + k - pad, 0, L - 1)
        xk = x[:, idx, :].astype(jnp.float32)
        out = out + jnp.einsum("bsc,oc->bso", xk,
                               weight[:, :, k].astype(jnp.float32),
                               precision=jax.lax.Precision.HIGHEST)
    return out


def _make_inputs(key, B, L, c_in, d_model, d_kernel=3):
    kx, kw = jax.random.split(key)
    x = jax.random.normal(kx, (B, L, c_in), dtype=jnp.float32)
    # Deterministic kaiming_normal_(mode='fan_in', nonlinearity='leaky_relu'):
    fan_in = c_in * d_kernel
    gain = math.sqrt(2.0 / (1.0 + 0.01 ** 2))
    std = gain / math.sqrt(fan_in)
    w = std * jax.random.normal(kw, (d_model, c_in, d_kernel), dtype=jnp.float32)
    return x, w


if __name__ == "__main__":
    k1, k2, k3 = jax.random.split(jax.random.PRNGKey(0), 3)

    # 1) Small shapes (d_model < 128 exercises the lane-padding + slice path).
    x, w = _make_inputs(k1, B=2, L=8, c_in=4, d_model=32)
    y = token_embedding(x, w, seqlen=8)
    jax.block_until_ready(y)
    assert y.shape == (2, 8, 32)
    assert jnp.allclose(y, _reference(x, w, 8), atol=1e-3, rtol=1e-3), "case 1 mismatch"

    # 2) Production-like shapes: seqlen < L, multiple batch rows per grid step.
    x, w = _make_inputs(k2, B=4, L=160, c_in=7, d_model=512)
    y = token_embedding(x, w, seqlen=128)
    jax.block_until_ready(y)
    assert y.shape == (4, 128, 512)
    y_ref = _reference(x, w, 128)
    assert jnp.allclose(y, y_ref, atol=1e-3, rtol=1e-3), "case 2 mismatch"

    # 2b) Optional bf16 I/O path (halves HBM traffic); loose tolerance.
    y16 = token_embedding(x, w, seqlen=128, compute_dtype=jnp.bfloat16)
    jax.block_until_ready(y16)
    assert y16.dtype == jnp.bfloat16
    assert jnp.allclose(y16.astype(jnp.float32), y_ref, atol=1e-1, rtol=5e-2), \
        "case 2b (bf16) mismatch"

    # 3) B == 1: the seqlen axis is split so both v7x TensorCores get work.
    x, w = _make_inputs(k3, B=1, L=256, c_in=5, d_model=256)
    y = token_embedding(x, w, seqlen=256)
    jax.block_until_ready(y)
    assert y.shape == (1, 256, 256)
    assert jnp.allclose(y, _reference(x, w, 256), atol=1e-3, rtol=1e-3), "case 3 mismatch"

    print("KERNEL_OK")
</pallas_src>

<mosaic_0001>
module attributes {stable_mosaic.version = 11 : i64} {
  func.func @_token_embed_kernel(%arg0: i32, %arg1: i32, %arg2: memref<1x10x4xf32, #tpu.memory_space<vmem>>, %arg3: memref<12x128xf32, #tpu.memory_space<vmem>>, %arg4: memref<1x8x128xf32, #tpu.memory_space<vmem>>, %arg5: memref<1x8x12xf32, #tpu.memory_space<vmem>>) attributes {dimension_semantics = [#tpu.dimension_semantics<parallel>, #tpu.dimension_semantics<parallel>], iteration_bounds = array<i64: 2, 1>, scalar_prefetch = 0 : i64, scratch_operands = 1 : i64, tpu.core_type = #tpu.core_type<tc>, window_params = [{transform_indices = @transform_0, window_bounds = array<i64: 1, 10, 4>}, {pipeline_mode = #tpu.pipeline_mode<synchronous>, transform_indices = @transform_1, window_bounds = array<i64: 12, 128>}, {transform_indices = @transform_2, window_bounds = array<i64: 1, 8, 128>}]} {
    %c8_i32 = arith.constant 8 : i32
    %0 = arith.muli %arg1, %c8_i32 : i32
    %1 = tpu.assume_multiple %0, 8 : i32
    %c0 = arith.constant 0 : index
    %c0_0 = arith.constant 0 : index
    %2 = vector.load %arg3[%c0, %c0_0] : memref<12x128xf32, #tpu.memory_space<vmem>>, vector<12x128xf32>
    %c0_i32 = arith.constant 0 : i32
    %3 = arith.addi %1, %c0_i32 : i32
    %c0_1 = arith.constant 0 : index
    %4 = arith.index_cast %3 : i32 to index
    %c0_2 = arith.constant 0 : index
    %5 = vector.load %arg2[%c0_1, %4, %c0_2] : memref<1x10x4xf32, #tpu.memory_space<vmem>>, vector<1x8x4xf32>
    %6 = vector.shape_cast %5 : vector<1x8x4xf32> to vector<8x4xf32>
    %c0_3 = arith.constant 0 : index
    %c0_4 = arith.constant 0 : index
    %c0_5 = arith.constant 0 : index
    %7 = vector.load %arg5[%c0_3, %c0_4, %c0_5] : memref<1x8x12xf32, #tpu.memory_space<vmem>>, vector<1x8x4xf32>
    %8 = vector.shape_cast %7 : vector<1x8x4xf32> to vector<8x4xf32>
    %9 = vector.shape_cast %6 : vector<8x4xf32> to vector<1x8x4xf32>
    tpu.vector_store %arg5[%c0_3, %c0_4, %c0_5], %9 {strides = array<i32>} : memref<1x8x12xf32, #tpu.memory_space<vmem>>, vector<1x8x4xf32>,
    %c1_i32 = arith.constant 1 : i32
    %10 = arith.addi %1, %c1_i32 : i32
    %c0_6 = arith.constant 0 : index
    %11 = arith.index_cast %10 : i32 to index
    %c0_7 = arith.constant 0 : index
    %12 = vector.load %arg2[%c0_6, %11, %c0_7] : memref<1x10x4xf32, #tpu.memory_space<vmem>>, vector<1x8x4xf32>
    %13 = vector.shape_cast %12 : vector<1x8x4xf32> to vector<8x4xf32>
    %c0_8 = arith.constant 0 : index
    %c0_9 = arith.constant 0 : index
    %c4 = arith.constant 4 : index
    %14 = vector.load %arg5[%c0_8, %c0_9, %c4] : memref<1x8x12xf32, #tpu.memory_space<vmem>>, vector<1x8x4xf32>
    %15 = vector.shape_cast %14 : vector<1x8x4xf32> to vector<8x4xf32>
    %16 = vector.shape_cast %13 : vector<8x4xf32> to vector<1x8x4xf32>
    tpu.vector_store %arg5[%c0_8, %c0_9, %c4], %16 {strides = array<i32>} : memref<1x8x12xf32, #tpu.memory_space<vmem>>, vector<1x8x4xf32>,
    %c2_i32 = arith.constant 2 : i32
    %17 = arith.addi %1, %c2_i32 : i32
    %c0_10 = arith.constant 0 : index
    %18 = arith.index_cast %17 : i32 to index
    %c0_11 = arith.constant 0 : index
    %19 = vector.load %arg2[%c0_10, %18, %c0_11] : memref<1x10x4xf32, #tpu.memory_space<vmem>>, vector<1x8x4xf32>
    %20 = vector.shape_cast %19 : vector<1x8x4xf32> to vector<8x4xf32>
    %c0_12 = arith.constant 0 : index
    %c0_13 = arith.constant 0 : index
    %c8 = arith.constant 8 : index
    %21 = vector.load %arg5[%c0_12, %c0_13, %c8] : memref<1x8x12xf32, #tpu.memory_space<vmem>>, vector<1x8x4xf32>
    %22 = vector.shape_cast %21 : vector<1x8x4xf32> to vector<8x4xf32>
    %23 = vector.shape_cast %20 : vector<8x4xf32> to vector<1x8x4xf32>
    tpu.vector_store %arg5[%c0_12, %c0_13, %c8], %23 {strides = array<i32>} : memref<1x8x12xf32, #tpu.memory_space<vmem>>, vector<1x8x4xf32>,
    %c0_14 = arith.constant 0 : index
    %c0_15 = arith.constant 0 : index
    %c0_16 = arith.constant 0 : index
    %24 = vector.load %arg5[%c0_14, %c0_15, %c0_16] : memref<1x8x12xf32, #tpu.memory_space<vmem>>, vector<1x8x12xf32>
    %25 = vector.shape_cast %24 : vector<1x8x12xf32> to vector<8x12xf32>
    %cst = arith.constant dense<0.000000e+00> : vector<8x128xf32>
    %26 = tpu.matmul %25, %2, %cst {dimension_numbers = #tpu.dot_dimension_numbers<[1], [0], [0], [1], [0, 0, 1, 1], [], []>} : vector<8x12xf32>, vector<12x128xf32>, vector<8x128xf32> -> vector<8x128xf32>
    %c0_17 = arith.constant 0 : index
    %c0_18 = arith.constant 0 : index
    %c0_19 = arith.constant 0 : index
    %27 = vector.load %arg4[%c0_17, %c0_18, %c0_19] : memref<1x8x128xf32, #tpu.memory_space<vmem>>, vector<1x8x128xf32>
    %28 = vector.shape_cast %27 : vector<1x8x128xf32> to vector<8x128xf32>
    %29 = vector.shape_cast %26 : vector<8x128xf32> to vector<1x8x128xf32>
    tpu.vector_store %arg4[%c0_17, %c0_18, %c0_19], %29 {strides = array<i32>} : memref<1x8x128xf32, #tpu.memory_space<vmem>>, vector<1x8x128xf32>,
    return
  }
  func.func @transform_0(%arg0: i32, %arg1: i32) -> (i32, i32, i32) {
    %c0_i32 = arith.constant 0 : i32
    %c0_i32_0 = arith.constant 0 : i32
    %c0_i32_1 = arith.constant 0 : i32
    return %arg0, %c0_i32, %c0_i32_0 : i32, i32, i32
  }
  func.func @transform_1(%arg0: i32, %arg1: i32) -> (i32, i32) {
    %c0_i32 = arith.constant 0 : i32
    %c0_i32_0 = arith.constant 0 : i32
    %c0_i32_1 = arith.constant 0 : i32
    return %c0_i32, %c0_i32_0 : i32, i32
  }
  func.func @transform_2(%arg0: i32, %arg1: i32) -> (i32, i32, i32) {
    %c0_i32 = arith.constant 0 : i32
    %c0_i32_0 = arith.constant 0 : i32
    return %arg0, %arg1, %c0_i32 : i32, i32, i32
  }
}

</mosaic_0001>

<bundles_post_ra>
// kernel: tpu_custom_call.1
= control target key start
LH: loop header
LB: loop body
LE: loop exit
PB: predicated region body
PF: predicated region fallthrough
CT: control target
= control target key end

     0   :  { %7 = vsyncpa [#allocation4], 0  ;;  %s664_s0 = inlined_call_operand.vmem [shape: f32[2,10,4], index: 0, kind: input, shape index: {}]   ;;  %s665_s1 = inlined_call_operand.vmem [shape: f32[12,128], index: 1, kind: input, shape index: {}]   ;;  %s666_s2 = inlined_call_operand.hbm [shape: f32[2,8,128], index: 2, kind: output, shape index: {}]  }
   0x1   :  { %9 = vsyncpa [#allocation4 + $0x1], 0  ;;  %s546_s9 = smov 0   ;;  %s548_s10 = smov 0  }
   0x2   :  { %s550_s11 = smov 0   ;;  %s552_s12 = smov 0  }
   0x3   :  { %s554_s13 = smov 0   ;;  %s556_s14 = smov 0  }
   0x4 LB: > { %s352_s15 = sadd.s32 4294967295, %s522_s14   ;;  %s353_s16 = sadd.s32 4294967294, %s522_s14   ;;  %s522_s14 = sphi %s556_s14, %s15_s14   ;;  %s518_s13 = sphi %s554_s13, %s673_s13   ;;  %s514_s12 = sphi %s552_s12, %s672_s12   ;;  %s510_s11 = sphi %s550_s11, %s671_s11   ;;  %s506_s10 = sphi %s548_s10, %s670_s10   ;;  %s502_s9 = sphi %s546_s9, %s669_s9  }
   0x5   : > { %s27_s17 = sadd.s32 1, %s518_s13  ;;  %s83_s18 = sadd.s32 1, %s510_s11 }
   0x6   : > { %p29_p0 = scmp.ge.s32.totalorder %s27_s17, 2  ;;  %p93_p1 = scmp.ne.s32.totalorder %s510_s11, %s506_s10 }
   0x7   : > { %p94_p2 = scmp.eq.s32.totalorder %s352_s15, 1  ;;  %p99_p3 = scmp.ne.s32.totalorder %s506_s10, %s502_s9 }
   0x8   : > { %s675_s17 = smov (%p29_p0, %s27_s17), 0  ;;  %p100_p5 = scmp.eq.s32.totalorder %s353_s16, 1 }
   0x9   : > { %p586_p4 = por %p94_p2, %p93_p1  ;;  %s78_s20 = ssub.s32 %s518_s13, %s675_s17 }
   0xa   : > { %p356_p6 = scmp.ge.s32.totalorder %s522_s14, 1  ;;  %p81_p7 = scmp.eq.s32.totalorder %s78_s20, 0 }
   0xb   : > { %p593_p8 = por %p100_p5, %p99_p3  ;;  %p129_p9 = scmp.lt.s32.totalorder %s522_s14, 3 }
   0xc   : > { %s599_s22 = scalar_select %p81_p7, %s510_s11, %s83_s18  }
   0xd   : > { %p130_p10 = pnand %p356_p6, %p129_p9 }
   0xe   : > { %p151_p11 = scmp.lt.s32.totalorder (!%p130_p10), %s514_s12, 1  ;;  %v524_v0 = vmov (!%p130_p10), 0.0|0.0   ;;  %v157_v1 = vld [vmem:[%s665_s1] sm:$0xff] (!%p130_p10)  ;;  %v158_v2 = vld [vmem:[%s665_s1 + $0x8] sm:$0xf] (!%p130_p10)  ;;  %vm186_vm0 = vcmask (!%p130_p10), 1043456  }
   0xf   : > { %133 = sbr.rel (%p130_p10) target bundleno = 380 (0x17c), region = 28  ;;  %379 = vmatprep.subr.bf16.mxu0 (!%p130_p10), %v524_v0  ;;  %v380_v3 = vpack.c.bf16 (!%p130_p10), %v158_v2, %v157_v1  ;;  %vm525_vm1 = vmmov (!%p130_p10), 1   ;;  %vm526_vm3 = vmmov (!%p130_p10), 0   ;;  %v527_v4 = vmov (!%p130_p10), 0.0   ;;  %s528_s4 = smov (!%p130_p10), 4  }
  0x10   : > { %vm381_vm2 = vmpackc.low (!%p130_p10), %vm186_vm0, %vm525_vm1  ;;  %376 = vmatprep.mubr.msk.f32.mxu0 (!%p130_p10), %vm526_vm3, %v527_v4  ;;  %vm161_vm4 = vcmask (!%p130_p10), 31744   ;;  %s529_s5 = smov (!%p130_p10), 8   ;;  %vm170_vm5 = vcmask (!%p130_p10), 64544   ;;  %vm179_vm6 = vcmask (!%p130_p10), 97344   ;;  %vm182_vm7 = vcmask (!%p130_p10), 97280   ;;  %s148_s6 = sand.u32 (!%p130_p10), 1, %s506_s10  }
  0x11   : > { %382 = vmatpush3.bf16.msk.msra.mxu0 (!%p130_p10), %vm381_vm2, %v380_v3  ;;  %s357_s7 = sshll.u32 (!%p130_p10), %s148_s6, 3  ;;  %s365_s16 = sshll.u32 (!%p130_p10), %s514_s12, 7 }
  0x12   : > { %s150_s8 = scalar_lea.vmem (!%p130_p10), [#allocation3], %s357_s7  ;;  %s619_s23 = scalar_lea.hbm (!%p130_p10), %s666_s2, %s365_s16 }
  0x13   : > { %s276_s15 = sshll.u32 (!%p130_p10), %s150_s8, 4  ;;  %s262_s24 = scalar_lea.sflag (!%p130_p10), [#allocation4], %s148_s6  ;;  %s614_s15 = int_to_ptr.vmem [resolvable:$true] %s276_s15 }
  0x14   : > { %s444_s25 = scalar_lea.vmem (!%p130_p10), %s614_s15, 128 }
  0x15   : > { %p445_p12 = scmp.ne.s32.totalorder (!%p130_p10), %s614_s15, %s444_s25 }
  0x16   : > { %s152_s27 = scalar_select %p151_p11, %s514_s12, 1 }
  0x17   : > { %p446_p13 = pnand %p445_p12, %p586_p4  ;;  %s530_s12 = smov [#allocation3]  }
  0x18   : > { %s368_s28 = sshll.u32 %s152_s27, 4  ;;  %s448_s26 = sshll.u32 %s530_s12, 4  ;;  %s449_s26 = int_to_ptr.vmem [resolvable:$false] %s448_s26 }
  0x19   : > { %s155_s3 = scalar_lea.vmem %s664_s0, %s368_s28  ;;  %p447_p0 = pneg %p446_p13 }
  0x1a   : > { %v360_v5 = vld [vmem:[%s155_s3 + $0x1] sm:$0xff]  ;;  %s450_s27 = scalar_lea.vmem %s449_s26, 256  ;;  %p451_p1 = scmp.lt.s32.totalorder %s614_s15, %s449_s26 }
  0x1b   : > { %v160_v6 = vld [vmem:[%s155_s3] sm:$0xff]  ;;  %167 = vrot.lane.b32.xlu0 %v360_v5, %s528_s4  ;;  %p452_p2 = scmp.lt.s32.totalorder %s450_s27, %s444_s25 }
  0x1c   : > { %162 = vst.msk [vmem:[#allocation2] sm:$0xff] %vm161_vm4, %v160_v6  ;;  %v361_v7 = vld [vmem:[%s155_s3 + $0x2] sm:$0xff] }
  0x1d   : > { %p453_p3 = por %p452_p2, %p451_p1 }
  0x1f   : > { %176 = vrot.lane.b32.xlu0 %v361_v7, %s529_s5  ;;  %p454_p5 = pnand %p453_p3, %p447_p0 }
  0x8d   : > { %v168_v8 = vpop.permute.xlu0 %167 }
  0x8e   : > { %171 = vst.msk [vmem:[#allocation2] sm:$0xff] %vm170_vm5, %v168_v8 }
  0x91   : > { %v177_v9 = vpop.permute.xlu0 %176 }
  0x92   : > { %180 = vst.msk [vmem:[#allocation2] sm:$0xff] %vm179_vm6, %v177_v9 }
  0x99   : > { %v181_v10 = vld [vmem:[#allocation2] sm:$0xff] }
  0x9a   : > { %377 = vmatmul.mubr.msk.f32.vlgmr.msra.gmra.mrb[0].mxu0 %vm182_vm7, %v181_v10 }
 0x16d   : > { %v256_v11 = vpop.f32.mrb[0].mxu0 }
 0x16e   : > { %260 = vst [vmem:[%s150_s8] sm:$0xff] %v256_v11  ;;  %v378_v12 = vpop.f32.mrb[1].mxu0 }
 0x16f   : > { %457 = shalt.err (!%p454_p5)
}
 0x170   : > { %s458_s28 = scalar_lea.hbm %s619_s23, 128  ;;  %s462_s3 = scalar_lea.hbm %s666_s2, 256 }
 0x171   : > { %p459_p6 = scmp.ne.s32.totalorder %s619_s23, %s458_s28  ;;  %p463_p10 = scmp.lt.u32.totalorder %s619_s23, %s666_s2 }
 0x172   : > { %p464_p11 = scmp.lt.u32.totalorder %s462_s3, %s458_s28  ;;  %p466_p13 = scmp.lt.u32.totalorder %s458_s28, %s619_s23 }
 0x173   : > { %p460_p7 = pnand %p459_p6, %p586_p4 }
 0x174   : > { %p465_p12 = por %p464_p11, %p463_p10 }
 0x175   : > { %p461_p9 = pneg %p460_p7 }
 0x176   : > { %p467_p0 = por %p466_p13, %p465_p12 }
 0x178   : > { %p468_p1 = pnand %p467_p0, %p461_p9 }
 0x17a   : > { %471 = shalt.err (!%p468_p1)
}
 0x17b   : > { %383 = dma.vmem_to_hbm [thread:$0]  (%p586_p4), %s614_s15, 128, %s619_s23, %s262_s24  }
 0x17c PF: > { %p389_p2 = scmp.ge.s32.totalorder %s522_s14, 2  ;;  %s288_s6 = sand.u32 1, %s502_s9  }
 0x17d   : > { %s289_s7 = scalar_lea.sflag [#allocation4], %s288_s6 }
 0x17e   : > { %p386_p3 = pnand %p389_p2, %p593_p8 }
 0x180   : > { %497 = dma.done.wait (!%p386_p3), %s289_s7, 128  }
 0x181   : > { %499 = vsyncadd (!%p386_p3), %s289_s7, 4294967168  ;;  %s15_s14 = sadd.s32 1, %s522_s14   ;;  %s669_s9 = smov %s506_s10 }
 0x182   : > { %p12_p5 = scmp.ge.s32.totalorder %s15_s14, 4   ;;  %s670_s10 = smov %s510_s11 }
 0x183   : > { %s671_s11 = smov %s599_s22  ;;  %s672_s12 = smov %s518_s13 }
 0x184   : > { %s673_s13 = smov %s675_s17  ;;  %14 = sbr.rel (!%p12_p5) target bundleno = 4 (0x4), region = 66 }
 0x18b   :  { %294 = vsyncpa [#allocation4], 1 }
 0x18c   :  { %296 = vsyncpa [#allocation4 + $0x1], 1 }

</bundles_post_ra>
